<compile_context>
chip_gen: v7x
topology: tpu7x:2x2x1
jax: 0.10.0
libtpu: 0.0.40
codegen_flags: <defaults>
</compile_context>

<pallas_src>
import functools

import jax
import jax.numpy as jnp
from jax import lax
from jax.experimental import pallas as pl
from jax.experimental.pallas import tpu as pltpu


def _normalize_kernel(zi_ref, zj_ref, zn_ref, psim_ref):
    """One-time prepass: L2 row-normalize, cast to bf16, positive-pair sims."""
    zi = zi_ref[...].astype(jnp.float32)      # (B, D)
    zj = zj_ref[...].astype(jnp.float32)      # (B, D)

    # F.normalize(p=2, dim=1, eps=1e-12)  ==  x * rsqrt(max(sum(x*x), eps^2))
    zi_n = zi * lax.rsqrt(jnp.maximum(jnp.sum(zi * zi, axis=1, keepdims=True), 1e-24))
    zj_n = zj * lax.rsqrt(jnp.maximum(jnp.sum(zj * zj, axis=1, keepdims=True), 1e-24))

    zi_b = zi_n.astype(jnp.bfloat16)
    zj_b = zj_n.astype(jnp.bfloat16)
    zn_ref[0] = zi_b                          # rows [0, B)   of the concat
    zn_ref[1] = zj_b                          # rows [B, 2B)  of the concat

    # Target-class similarity per row:
    #   rows i >= B have label i-B  ->  sim[i, i-B] = <zn_j[i-B], zn_i[i-B]>
    #   rows i <  B have their label on the masked diagonal -> sentinel -inf
    #     (exp(-inf - m) == 0, matching target logit == 0 exactly).
    pos = jnp.sum(zi_b.astype(jnp.float32) * zj_b.astype(jnp.float32),
                  axis=1, keepdims=True)                        # (B, 1)
    psim_ref[0] = jnp.full_like(pos, -jnp.inf)
    psim_ref[1] = pos


def _infonce_tile_kernel(zn_ref, q_ref, psim_ref, o_ref, *, inv_temperature):
    """One row-tile of the InfoNCE loss: (TM rows) x (all 2B columns)."""
    q = q_ref[...]                            # (TM, D)  bf16, this tile's rows
    kall = zn_ref[...]                        # (2B, D)  bf16, resident in VMEM
    tm = q.shape[0]
    n2b = kall.shape[0]

    # Cosine similarity tile on the MXU: contract on D (no explicit transpose),
    # bf16 inputs, f32 accumulation.  Rows are already unit norm, so this IS
    # the cosine similarity (second renormalization removed).
    sim = lax.dot_general(q, kall, (((1,), (1,)), ((), ())),
                          preferred_element_type=jnp.float32)   # (TM, 2B) f32

    # masked_fill_(eye(2B), -inf): single iota compare per tile.
    r0 = pl.program_id(0) * tm
    row = lax.broadcasted_iota(jnp.int32, (tm, n2b), 0) + r0
    col = lax.broadcasted_iota(jnp.int32, (tm, n2b), 1)
    sim = jnp.where(row == col, -jnp.inf, sim)

    # Row softmax; fold 1/temperature into the per-row scale so that
    # logits = e * c with a single reciprocal per row (EUP, approx).
    m = jnp.max(sim, axis=1, keepdims=True)                     # (TM, 1)
    e = jnp.exp(sim - m)                                        # (TM, 2B)
    s = jnp.sum(e, axis=1, keepdims=True)                       # (TM, 1)
    c = pl.reciprocal(s, approx=True) * inv_temperature         # (TM, 1)

    # Cross entropy over logits = e * c.  max_j e == 1 exactly, so the per-row
    # max of the logits is c and the stable logsumexp needs no second max pass.
    t = jnp.exp(e * c - c)                                      # (TM, 2B)
    lse = jnp.log(jnp.sum(t, axis=1, keepdims=True)) + c        # (TM, 1)

    # Target logit picked per row from the prepass similarity (no full-matrix
    # compare/select): exp(-inf - m) == 0 handles labels on the masked diagonal.
    tgt = jnp.exp(psim_ref[...] - m) * c                        # (TM, 1)

    partial = jnp.sum(lse - tgt)                                # scalar
    lane = lax.broadcasted_iota(jnp.int32, (1, 1, 128), 2)
    o_ref[...] = jnp.where(lane == 0, partial, 0.0)             # lane-dense store


def _pick_row_tile(n2b, cap=256):
    """Largest multiple-of-16 divisor of 2B that is <= cap; else full extent."""
    best = n2b                      # full-extent block is always legal
    t = 16
    while t <= min(cap, n2b):
        if n2b % t == 0:
            best = t
        t += 16
    return best


def infonce_loss(z_i, z_j, temperature=1.0, row_tile=None):
    assert z_i.shape == z_j.shape and z_i.ndim == 2
    b, d = z_i.shape
    n2b = 2 * b

    zi = z_i.astype(jnp.float32)
    zj = z_j.astype(jnp.float32)

    # ---- prepass: normalize -> bf16 features + positive-pair sims ----------
    zn2, psim2 = pl.pallas_call(
        _normalize_kernel,
        out_shape=(jax.ShapeDtypeStruct((2, b, d), jnp.bfloat16),
                   jax.ShapeDtypeStruct((2, b, 1), jnp.float32)),
        in_specs=[pl.BlockSpec((b, d), lambda: (0, 0)),
                  pl.BlockSpec((b, d), lambda: (0, 0))],
        out_specs=(pl.BlockSpec((2, b, d), lambda: (0, 0, 0)),
                   pl.BlockSpec((2, b, 1), lambda: (0, 0, 0))),
    )(zi, zj)
    zn = zn2.reshape(n2b, d)        # contiguous merge of leading dims: free
    psim = psim2.reshape(n2b, 1)

    # ---- main row-tiled kernel ---------------------------------------------
    if row_tile is None:
        tm = _pick_row_tile(n2b)
    else:
        tm = int(row_tile)
        if n2b % tm != 0 or (tm != n2b and tm % 16 != 0):
            raise ValueError("row_tile must divide 2*B and be a multiple of 16")
    nt = n2b // tm

    kernel = functools.partial(_infonce_tile_kernel,
                               inv_temperature=1.0 / float(temperature))
    parts = pl.pallas_call(
        kernel,
        out_shape=jax.ShapeDtypeStruct((nt, 1, 128), jnp.float32),
        grid=(nt,),
        in_specs=[pl.BlockSpec((n2b, d), lambda i: (0, 0)),   # resident K-side feats
                  pl.BlockSpec((tm, d), lambda i: (i, 0)),    # Q-side row tile
                  pl.BlockSpec((tm, 1), lambda i: (i, 0))],   # target sims per row
        out_specs=pl.BlockSpec((1, 1, 128), lambda i: (i, 0, 0)),
        compiler_params=pltpu.CompilerParams(
            dimension_semantics=("parallel",),                 # v7x: 2 TCs
            vmem_limit_bytes=32 * 1024 * 1024),                # raise for big 2B
    )(zn, zn, psim)

    # F.cross_entropy(..., reduction='sum') / (2B)
    return jnp.sum(parts) / n2b


def _infonce_ref(z_i, z_j, temperature=1.0):
    # pure-JAX f32 reference mirroring the PyTorch forward
    def norm(x):
        return x / jnp.maximum(jnp.linalg.norm(x, axis=1, keepdims=True), 1e-12)
    z = jnp.concatenate([norm(z_i), norm(z_j)], axis=0)
    n = jnp.maximum(jnp.linalg.norm(z, axis=1, keepdims=True), 1e-8)
    sim = (z @ z.T) / (n * n.T)
    n2b = z.shape[0]
    b = n2b // 2
    sim = jnp.where(jnp.eye(n2b, dtype=bool), -jnp.inf, sim)
    logits = jax.nn.softmax(sim, axis=1) / temperature
    labels = jnp.concatenate([jnp.arange(b), jnp.arange(b)])
    logp = jax.nn.log_softmax(logits, axis=1)
    return -jnp.sum(logp[jnp.arange(n2b), labels]) / n2b


if __name__ == "__main__":
    B, D = 16, 32
    key = jax.random.PRNGKey(0)
    k1, k2 = jax.random.split(key)
    z_i = jax.random.normal(k1, (B, D), dtype=jnp.float32)
    z_j = jax.random.normal(k2, (B, D), dtype=jnp.float32)

    # Tiled path (2 row tiles) and auto-tile path (single full-extent tile).
    loss_tiled = infonce_loss(z_i, z_j, temperature=1.0, row_tile=16)
    loss_auto = infonce_loss(z_i, z_j, temperature=1.0)
    jax.block_until_ready((loss_tiled, loss_auto))

    ref = _infonce_ref(z_i, z_j, temperature=1.0)
    # bf16 MXU matmul + approx reciprocal -> compare at a bf16-appropriate tol.
    assert jnp.allclose(loss_tiled, ref, atol=1e-2, rtol=1e-2), (loss_tiled, ref)
    assert jnp.allclose(loss_auto, ref, atol=1e-2, rtol=1e-2), (loss_auto, ref)

    print("KERNEL_OK")
</pallas_src>

<mosaic_0001>
module attributes {stable_mosaic.version = 11 : i64} {
  func.func @_normalize_kernel(%arg0: memref<16x32xf32, #tpu.memory_space<vmem>>, %arg1: memref<16x32xf32, #tpu.memory_space<vmem>>, %arg2: memref<2x16x32xbf16, #tpu.memory_space<vmem>>, %arg3: memref<2x16x1xf32, #tpu.memory_space<vmem>>) attributes {dimension_semantics = [], scalar_prefetch = 0 : i64, scratch_operands = 0 : i64, tpu.core_type = #tpu.core_type<tc>} {
    %c0 = arith.constant 0 : index
    %c0_0 = arith.constant 0 : index
    %0 = vector.load %arg0[%c0, %c0_0] : memref<16x32xf32, #tpu.memory_space<vmem>>, vector<16x32xf32>
    %c0_1 = arith.constant 0 : index
    %c0_2 = arith.constant 0 : index
    %1 = vector.load %arg1[%c0_1, %c0_2] : memref<16x32xf32, #tpu.memory_space<vmem>>, vector<16x32xf32>
    %2 = arith.mulf %0, %0 : vector<16x32xf32>
    %cst = arith.constant dense<0.000000e+00> : vector<16xf32>
    %3 = vector.multi_reduction <add>, %2, %cst [1] : vector<16x32xf32> to vector<16xf32>
    %4 = vector.shape_cast %3 : vector<16xf32> to vector<16x1xf32>
    %cst_3 = arith.constant 1.000000e-24 : f32
    %5 = vector.broadcast %cst_3 : f32 to vector<16x1xf32>
    %6 = arith.maximumf %4, %5 : vector<16x1xf32>
    %7 = math.rsqrt %6 : vector<16x1xf32>
    %8 = vector.broadcast %7 : vector<16x1xf32> to vector<16x32xf32>
    %9 = arith.mulf %0, %8 : vector<16x32xf32>
    %10 = arith.mulf %1, %1 : vector<16x32xf32>
    %cst_4 = arith.constant dense<0.000000e+00> : vector<16xf32>
    %11 = vector.multi_reduction <add>, %10, %cst_4 [1] : vector<16x32xf32> to vector<16xf32>
    %12 = vector.shape_cast %11 : vector<16xf32> to vector<16x1xf32>
    %cst_5 = arith.constant 1.000000e-24 : f32
    %13 = vector.broadcast %cst_5 : f32 to vector<16x1xf32>
    %14 = arith.maximumf %12, %13 : vector<16x1xf32>
    %15 = math.rsqrt %14 : vector<16x1xf32>
    %16 = vector.broadcast %15 : vector<16x1xf32> to vector<16x32xf32>
    %17 = arith.mulf %1, %16 : vector<16x32xf32>
    %18 = arith.truncf %9 : vector<16x32xf32> to vector<16x32xbf16>
    %19 = arith.truncf %17 : vector<16x32xf32> to vector<16x32xbf16>
    %c0_6 = arith.constant 0 : index
    %c0_7 = arith.constant 0 : index
    %c0_8 = arith.constant 0 : index
    %20 = vector.load %arg2[%c0_6, %c0_7, %c0_8] : memref<2x16x32xbf16, #tpu.memory_space<vmem>>, vector<1x16x32xbf16>
    %21 = vector.shape_cast %20 : vector<1x16x32xbf16> to vector<16x32xbf16>
    %22 = vector.shape_cast %18 : vector<16x32xbf16> to vector<1x16x32xbf16>
    tpu.vector_store %arg2[%c0_6, %c0_7, %c0_8], %22 {strides = array<i32>} : memref<2x16x32xbf16, #tpu.memory_space<vmem>>, vector<1x16x32xbf16>,
    %c1 = arith.constant 1 : index
    %c0_9 = arith.constant 0 : index
    %c0_10 = arith.constant 0 : index
    %23 = vector.load %arg2[%c1, %c0_9, %c0_10] : memref<2x16x32xbf16, #tpu.memory_space<vmem>>, vector<1x16x32xbf16>
    %24 = vector.shape_cast %23 : vector<1x16x32xbf16> to vector<16x32xbf16>
    %25 = vector.shape_cast %19 : vector<16x32xbf16> to vector<1x16x32xbf16>
    tpu.vector_store %arg2[%c1, %c0_9, %c0_10], %25 {strides = array<i32>} : memref<2x16x32xbf16, #tpu.memory_space<vmem>>, vector<1x16x32xbf16>,
    %26 = arith.extf %18 : vector<16x32xbf16> to vector<16x32xf32>
    %27 = arith.extf %19 : vector<16x32xbf16> to vector<16x32xf32>
    %28 = arith.mulf %26, %27 : vector<16x32xf32>
    %cst_11 = arith.constant dense<0.000000e+00> : vector<16xf32>
    %29 = vector.multi_reduction <add>, %28, %cst_11 [1] : vector<16x32xf32> to vector<16xf32>
    %30 = vector.shape_cast %29 : vector<16xf32> to vector<16x1xf32>
    %cst_12 = arith.constant 0xFF800000 : f32
    %31 = vector.broadcast %cst_12 : f32 to vector<16x1xf32>
    %c0_13 = arith.constant 0 : index
    %c0_14 = arith.constant 0 : index
    %c0_15 = arith.constant 0 : index
    %32 = vector.load %arg3[%c0_13, %c0_14, %c0_15] : memref<2x16x1xf32, #tpu.memory_space<vmem>>, vector<1x16x1xf32>
    %33 = vector.shape_cast %32 : vector<1x16x1xf32> to vector<16x1xf32>
    %34 = vector.shape_cast %31 : vector<16x1xf32> to vector<1x16x1xf32>
    tpu.vector_store %arg3[%c0_13, %c0_14, %c0_15], %34 {strides = array<i32>} : memref<2x16x1xf32, #tpu.memory_space<vmem>>, vector<1x16x1xf32>,
    %c1_16 = arith.constant 1 : index
    %c0_17 = arith.constant 0 : index
    %c0_18 = arith.constant 0 : index
    %35 = vector.load %arg3[%c1_16, %c0_17, %c0_18] : memref<2x16x1xf32, #tpu.memory_space<vmem>>, vector<1x16x1xf32>
    %36 = vector.shape_cast %35 : vector<1x16x1xf32> to vector<16x1xf32>
    %37 = vector.shape_cast %30 : vector<16x1xf32> to vector<1x16x1xf32>
    tpu.vector_store %arg3[%c1_16, %c0_17, %c0_18], %37 {strides = array<i32>} : memref<2x16x1xf32, #tpu.memory_space<vmem>>, vector<1x16x1xf32>,
    return
  }
}

</mosaic_0001>

<bundles_post_ra>
// kernel: tpu_custom_call.1
= control target key start
LH: loop header
LB: loop body
LE: loop exit
PB: predicated region body
PF: predicated region fallthrough
CT: control target
= control target key end

     0   :  { %9 = vsyncpa [#allocation3], 0  ;;  %s325_s0 = inlined_call_operand.hbm [shape: f32[16,32], index: 0, kind: input, shape index: {}]   ;;  %s326_s1 = inlined_call_operand.hbm [shape: f32[16,32], index: 1, kind: input, shape index: {}]   ;;  %s327_s2 = inlined_call_operand.hbm [shape: bf16[2,16,32], index: 2, kind: output, shape index: {0}]   ;;  %s328_s3 = inlined_call_operand.vmem [shape: f32[2,16,1], index: 3, kind: output, shape index: {1}]  }
   0x1   :  { %10 = vsyncpa [#allocation6], 0 }
   0x2   :  { %11 = vsyncpa [#allocation4], 0  ;;  %s235_s12 = smov [#allocation2]   ;;  %s163_s16 = scalar_lea.hbm %s325_s0, 256 }
   0x3   :  { %s17_s13 = sshll.u32 %s235_s12, 4  ;;  %p164_p0 = scmp.ne.s32.totalorder %s325_s0, %s163_s16  ;;  %s18_s13 = int_to_ptr.vmem [resolvable:$true] %s17_s13 }
   0x4   :  { %p167_p1 = scmp.lt.u32.totalorder %s163_s16, %s325_s0 }
   0x6   :  { %p169_p2 = pnand %p167_p1, %p164_p0 }
   0x8   :  { %172 = shalt.err (!%p169_p2)
}
   0x9   :  { %s173_s21 = scalar_lea.vmem %s18_s13, 256  ;;  %p178_p4 = scmp.lt.s32.totalorder %s18_s13, %s18_s13 }
   0xa   :  { %p174_p3 = scmp.ne.s32.totalorder %s18_s13, %s173_s21  ;;  %p179_p5 = scmp.lt.s32.totalorder %s173_s21, %s173_s21 }
   0xc   :  { %p180_p6 = por %p179_p5, %p178_p4 }
   0xe   :  { %p181_p7 = pnand %p180_p6, %p174_p3 }
  0x10   :  { %184 = shalt.err (!%p181_p7)
}
  0x11   :  { %s236_s22 = smov 128   ;;  %s237_s23 = smov 8  }
  0x12   :  { %23 = dma.hbm_to_vmem [thread:$0]  %s325_s0, 256, %s18_s13, [#allocation3], %s236_s22, %s236_s22, %s237_s23  }
  0x13   :  { %s238_s26 = smov [#allocation5]   ;;  %s185_s30 = scalar_lea.hbm %s326_s1, 256 }
  0x14   :  { %s29_s27 = sshll.u32 %s238_s26, 4  ;;  %p186_p8 = scmp.ne.s32.totalorder %s326_s1, %s185_s30  ;;  %s30_s27 = int_to_ptr.vmem [resolvable:$true] %s29_s27 }
  0x15   :  { %p189_p9 = scmp.lt.u32.totalorder %s185_s30, %s326_s1 }
  0x17   :  { %p191_p10 = pnand %p189_p9, %p186_p8 }
  0x19   :  { %194 = shalt.err (!%p191_p10)
}
  0x1a   :  { %s195_s8 = scalar_lea.vmem %s30_s27, 256  ;;  %p200_p12 = scmp.lt.s32.totalorder %s30_s27, %s30_s27 }
  0x1b   :  { %p196_p11 = scmp.ne.s32.totalorder %s30_s27, %s195_s8  ;;  %p201_p13 = scmp.lt.s32.totalorder %s195_s8, %s195_s8 }
  0x1d   :  { %p202_p0 = por %p201_p13, %p200_p12 }
  0x1f   :  { %p203_p1 = pnand %p202_p0, %p196_p11 }
  0x21   :  { %206 = shalt.err (!%p203_p1)
}
  0x22   :  { %35 = dma.hbm_to_vmem [thread:$0]  %s326_s1, 256, %s30_s27, [#allocation6], %s236_s22, %s236_s22, %s237_s23  }
  0x23   :  { %229 = dma.done.wait [#allocation3], 256  }
  0x24   :  { %230 = vsyncadd [#allocation3], 4294967040 }
  0x25   :  { %231 = dma.done.wait [#allocation6], 256  }
  0x26   :  { %232 = vsyncadd [#allocation6], 4294967040  ;;  %v44_v0 = vld [vmem:[#allocation5] sm:$0xff]  ;;  %vm48_vm0 = vcmask 261120   ;;  %v42_v1 = vld [vmem:[#allocation2] sm:$0xff]  ;;  %vm109_vm1 = vcmask 7168  }
  0x27   :  { %v45_v2 = vld [vmem:[#allocation5 + $0x8] sm:$0xff]  ;;  %v61_v3 = vmul.f32 %v44_v0, %v44_v0  ;;  %v46_v4 = vmul.f32 %v42_v1, %v42_v1  ;;  %v43_v6 = vld [vmem:[#allocation2 + $0x8] sm:$0xff]  ;;  %v239_v12 = vmov -inf   ;;  %vm84_vm2 = vcmask 257024   ;;  %s240_s13 = smov [#allocation7]  }
  0x28   :  { %v62_v5 = vmul.f32 %v45_v2, %v45_v2  ;;  %v47_v7 = vmul.f32 %v43_v6, %v43_v6  ;;  %110 = vst.msk [vmem:[%s328_s3] sm:$0xff] %vm109_vm1, %v239_v12  ;;  %111 = vst.msk [vmem:[%s328_s3 + $0x8] sm:$0xff] %vm109_vm1, %v239_v12  ;;  %s120_s14 = sshll.u32 %s240_s13, 4  ;;  %s121_s14 = int_to_ptr.vmem [resolvable:$true] %s120_s14 }
  0x29   :  { %v63_v8 = vsel %vm48_vm0, %v61_v3, 0.0  ;;  %v49_v9 = vsel %vm48_vm0, %v46_v4, 0.0  ;;  %s207_s15 = scalar_lea.vmem %s121_s14, 256  ;;  %p212_p3 = scmp.lt.s32.totalorder %s121_s14, %s121_s14 }
  0x2a   :  { %64 = vadd.xlane.f32.xlu1 %v63_v8  ;;  %50 = vadd.xlane.f32.xlu0 %v49_v9  ;;  %v66_v10 = vsel %vm48_vm0, %v62_v5, 0.0  ;;  %v52_v11 = vsel %vm48_vm0, %v47_v7, 0.0  ;;  %p208_p2 = scmp.ne.s32.totalorder %s121_s14, %s207_s15  ;;  %p213_p4 = scmp.lt.s32.totalorder %s207_s15, %s207_s15 }
  0x2c   :  { %p214_p5 = por %p213_p4, %p212_p3 }
  0x2e   :  { %67 = vadd.xlane.f32.xlu1 %v66_v10  ;;  %53 = vadd.xlane.f32.xlu0 %v52_v11  ;;  %p215_p6 = pnand %p214_p5, %p208_p2 }
  0xb7   :  { %v65_v13 = vpop.xlane.xlu1 %64  ;;  %v51_v14 = vpop.xlane.xlu0 %50 }
  0xb8   :  { %v69_v15 = vmax.f32 %v65_v13, 1e-24  ;;  %v55_v16 = vmax.f32 %v51_v14, 1e-24 }
  0xba   :  { %155 = vrsqrt.f32 %v69_v15 }
  0xbb   :  { %157 = vrsqrt.f32 %v55_v16  ;;  %v68_v17 = vpop.xlane.xlu1 %67  ;;  %v54_v18 = vpop.xlane.xlu0 %53 }
  0xbc   :  { %v70_v19 = vmax.f32 %v68_v17, 1e-24  ;;  %v56_v20 = vmax.f32 %v54_v18, 1e-24 }
  0xbe   :  { %159 = vrsqrt.f32 %v70_v19 }
  0xbf   :  { %161 = vrsqrt.f32 %v56_v20 }
  0xc4   :  { %v156_v21 = vpop.eup %155 }
  0xc5   :  { %v158_v22 = vpop.eup %157  ;;  %v73_v23 = vmul.f32 %v156_v21, %v44_v0 }
  0xc6   :  { %v59_v24 = vmul.f32 %v158_v22, %v42_v1 }
  0xc7   :  { %v145_v25 = vpack.c.bf16 %v73_v23, %v73_v23 }
  0xc8   :  { %v160_v26 = vpop.eup %159  ;;  %v143_v27 = vpack.c.bf16 %v59_v24, %v59_v24 }
  0xc9   :  { %v162_v28 = vpop.eup %161  ;;  %v74_v29 = vmul.f32 %v160_v26, %v45_v2  ;;  %95 = vst.msk [vmem:[#allocation7 + $0x8] sm:$0xf] %vm84_vm2, %v145_v25 }
  0xca   :  { %v60_v30 = vmul.f32 %v162_v28, %v43_v6  ;;  %85 = vst.msk [vmem:[#allocation7] sm:$0xf] %vm84_vm2, %v143_v27 }
  0xcb   :  { %v76_v31 = vpack.c.bf16 %v74_v29, %v73_v23  ;;  %v146_v32 = vpack.c.bf16 %v74_v29, %v74_v29 }
  0xcc   :  { %v75_v33 = vpack.c.bf16 %v60_v30, %v59_v24  ;;  %v144_v34 = vpack.c.bf16 %v60_v30, %v60_v30 }
  0xcd   :  { %96 = vst.msk [vmem:[#allocation7 + $0xc] sm:$0xf] %vm84_vm2, %v146_v32  ;;  %v100_v35 = vunpack.c.h.bf16 %v76_v31  ;;  %v99_v36 = vunpack.c.l.bf16 %v76_v31 }
  0xce   :  { %86 = vst.msk [vmem:[#allocation7 + $0x4] sm:$0xf] %vm84_vm2, %v144_v34  ;;  %v98_v37 = vunpack.c.h.bf16 %v75_v33  ;;  %v97_v38 = vunpack.c.l.bf16 %v75_v33 }
  0xd0   :  { %v102_v39 = vmul.f32 %v100_v35, %v98_v37  ;;  %v101_v40 = vmul.f32 %v99_v36, %v97_v38 }
  0xd2   :  { %v106_v41 = vsel %vm48_vm0, %v102_v39, 0.0  ;;  %v103_v42 = vsel %vm48_vm0, %v101_v40, 0.0 }
  0xd3   :  { %107 = vadd.xlane.f32.xlu1 %v106_v41  ;;  %104 = vadd.xlane.f32.xlu0 %v103_v42 }
  0xd4   :  { %218 = shalt.err (!%p215_p6)
}
  0xd5   :  { %s219_s18 = scalar_lea.hbm %s327_s2, 256 }
  0xd6   :  { %p220_p7 = scmp.ne.s32.totalorder %s327_s2, %s219_s18  ;;  %p223_p8 = scmp.lt.u32.totalorder %s219_s18, %s327_s2 }
  0xd8   :  { %p225_p9 = pnand %p223_p8, %p220_p7 }
  0xda   :  { %228 = shalt.err (!%p225_p9)
}
  0xdb   :  { %s241_s23 = smov 64   ;;  %s242_s24 = smov 4  }
  0xdc   :  { %126 = dma.vmem_to_hbm [thread:$0]  %s121_s14, 256, %s327_s2, [#allocation4], %s241_s23, %s241_s23, %s242_s24  }
 0x160   :  { %v108_v43 = vpop.xlane.xlu1 %107  ;;  %v105_v44 = vpop.xlane.xlu0 %104 }
 0x161   :  { %142 = vst.msk [vmem:[%s328_s3 + $0x18] sm:$0xff] %vm109_vm1, %v108_v43  ;;  %141 = vst.msk [vmem:[%s328_s3 + $0x10] sm:$0xff] %vm109_vm1, %v105_v44 }
 0x162   :  { %233 = dma.done.wait [#allocation4], 256  }
 0x163   :  { %234 = vsyncadd [#allocation4], 4294967040 }
 0x164   :  { %134 = vsyncpa [#allocation3], 1 }
 0x165   :  { %135 = vsyncpa [#allocation6], 1 }
 0x166   :  { %136 = vsyncpa [#allocation4], 1 }

</bundles_post_ra>
